<compile_context>
chip_gen: v6e
topology: v6e:2x2x1
jax: 0.10.0
libtpu: 0.0.40
codegen_flags: <defaults>
</compile_context>

<pallas_src>
import functools

import jax
import jax.numpy as jnp
from jax.experimental import pallas as pl
from jax.experimental.pallas import tpu as pltpu

LANE = 128  # TPU vreg lane width


def gcn_kernel(a_ref, x_ref, w1_ref, b1_ref, w2_ref, b2_ref, o_ref):
    a = a_ref[...]                                   # [M, M] bf16 block-diag adjacency
    x = x_ref[...]                                   # [M, F] bf16 stacked features

    # ---- layer 0: GraphConv(F -> H), activation=relu (single relu: idempotent) ----
    xw = jnp.dot(x, w1_ref[...], preferred_element_type=jnp.float32)          # [M, Hp]
    h = jnp.dot(a, xw.astype(a.dtype), preferred_element_type=jnp.float32)    # [M, Hp]
    h = jnp.maximum(h + b1_ref[...], 0.0)            # f32 bias + relu

    # ---- layer 1: GraphConv(H -> L), no activation ----
    hw = jnp.dot(h.astype(a.dtype), w2_ref[...], preferred_element_type=jnp.float32)   # [M, Lp]
    out = jnp.dot(a, hw.astype(a.dtype), preferred_element_type=jnp.float32) + b2_ref[...]
    o_ref[...] = out.astype(o_ref.dtype)             # lane-dense (Lp = 128) unmasked store


def _pad_last(m, width):
    pad = width - m.shape[-1]
    if pad == 0:
        return m
    return jnp.pad(m, [(0, 0)] * (m.ndim - 1) + [(0, pad)])


def make_gcn_params(w1, b1, w2, b2):
    """One-time weight preparation (pad H/L to the full 128-lane width + bf16 cast).
    Zero padding is exact: padded h columns are relu(0+0)=0 and padded W2 rows are 0."""
    hidden = w1.shape[1]
    labels = w2.shape[1]
    hp = pl.cdiv(hidden, LANE) * LANE
    lp = pl.cdiv(labels, LANE) * LANE
    w1p = _pad_last(w1, hp).astype(jnp.bfloat16)                                       # [F, Hp]
    b1p = _pad_last(b1, hp).astype(jnp.float32)                                        # [1, Hp]
    w2p = _pad_last(jnp.pad(w2, ((0, hp - hidden), (0, 0))), lp).astype(jnp.bfloat16)  # [Hp, Lp]
    b2p = _pad_last(b2, lp).astype(jnp.float32)                                        # [1, Lp]
    return (w1p, b1p, w2p, b2p), labels


def _choose_group_size(bsz, n, target_rows=128):
    """Largest #graphs per grid step such that the packed M dim stays <= target_rows,
    while keeping >= 2 grid steps when the batch allows (feeds both v7x TensorCores)."""
    best = 1
    for g in range(1, bsz + 1):
        if bsz % g:
            continue
        if g * n > target_rows:
            continue
        if bsz // g >= 2 or bsz == 1:
            best = g
    return best


@functools.partial(jax.jit, static_argnames=("labels",))
def gcn_forward(a, x, params, *, labels):
    """Batched GCN forward.  a: [B,N,N], x: [B,N,F]; params from make_gcn_params."""
    w1p, b1p, w2p, b2p = params
    bsz, n, f = x.shape
    hp = w1p.shape[1]
    lp = w2p.shape[1]

    # Pack graphs into a few big grid steps: block-diagonal A + row-stacked X.
    gps = _choose_group_size(bsz, n)      # graphs per step
    steps = bsz // gps
    m = gps * n                           # packed M (rows per step)

    a_bf = a.astype(jnp.bfloat16).reshape(steps, gps, n, n)
    eye = jnp.eye(gps, dtype=jnp.bfloat16)
    a_bd = jnp.einsum("sgnm,gh->sgnhm", a_bf, eye).reshape(steps, m, m)   # block-diag per step
    x_pk = x.astype(jnp.bfloat16).reshape(steps, m, f)

    flops = 2 * steps * m * (f * hp + m * hp + hp * lp + m * lp)
    bytes_accessed = (
        (a_bd.size + x_pk.size + w1p.size + w2p.size) * 2   # bf16 inputs
        + (b1p.size + b2p.size) * 4                         # f32 biases
        + steps * m * lp * 2                                # bf16 output
    )

    out_pk = pl.pallas_call(
        gcn_kernel,
        out_shape=jax.ShapeDtypeStruct((steps, m, lp), jnp.bfloat16),
        grid=(steps,),
        in_specs=[
            pl.BlockSpec((None, m, m), lambda s: (s, 0, 0)),   # block-diag A for step s
            pl.BlockSpec((None, m, f), lambda s: (s, 0, 0)),   # stacked X for step s
            pl.BlockSpec((f, hp), lambda s: (0, 0)),           # W1 (resident)
            pl.BlockSpec((1, hp), lambda s: (0, 0)),           # b1
            pl.BlockSpec((hp, lp), lambda s: (0, 0)),          # W2
            pl.BlockSpec((1, lp), lambda s: (0, 0)),           # b2
        ],
        out_specs=pl.BlockSpec((None, m, lp), lambda s: (s, 0, 0)),
        compiler_params=pltpu.CompilerParams(
            dimension_semantics=("parallel",),
        ),
        cost_estimate=pl.CostEstimate(
            flops=flops, transcendentals=0, bytes_accessed=bytes_accessed),
    )(a_bd, x_pk, w1p, b1p, w2p, b2p)

    # Unpack: [steps, M, Lp] -> [B, N, labels]; cast back to f32 (module output dtype).
    return out_pk.reshape(bsz, n, lp)[..., :labels].astype(jnp.float32)


def build_normalized_adjacency(key, n):
    """Deterministic random undirected graph; DGL-style 'both' normalization
    with self-loops: D^-1/2 (Adj + I) D^-1/2."""
    r = jax.random.uniform(key, (n, n))
    adj = (r + r.T > 1.2).astype(jnp.float32)              # symmetric random edges
    adj = adj * (1.0 - jnp.eye(n)) + jnp.eye(n)             # self-loops
    deg = jnp.sum(adj, axis=1)
    d_inv_sqrt = 1.0 / jnp.sqrt(jnp.maximum(deg, 1.0))
    return adj * d_inv_sqrt[:, None] * d_inv_sqrt[None, :]


def glorot(key, shape):
    fan_in, fan_out = shape
    limit = jnp.sqrt(6.0 / (fan_in + fan_out))
    return jax.random.uniform(key, shape, jnp.float32, -limit, limit)


if __name__ == "__main__":
    BATCH = 8            # packed into 2 parallel grid steps of 4 graphs -> M = 128 rows/step
    N = 32               # nodes per graph
    FEATURE_NUMBER = 64
    HIDDEN = 16          # fixed by GcnNet.__init__
    LABEL_NUMBER = 8

    key = jax.random.PRNGKey(0)
    k_adj, k_x, k_w1, k_w2 = jax.random.split(key, 4)

    adj_keys = jax.random.split(k_adj, BATCH)
    a = jax.vmap(build_normalized_adjacency, in_axes=(0, None))(adj_keys, N)   # [B,N,N]
    x = jax.random.normal(k_x, (BATCH, N, FEATURE_NUMBER), jnp.float32)        # [B,N,F]

    w1 = glorot(k_w1, (FEATURE_NUMBER, HIDDEN))
    b1 = jnp.zeros((1, HIDDEN), jnp.float32)
    w2 = glorot(k_w2, (HIDDEN, LABEL_NUMBER))
    b2 = jnp.zeros((1, LABEL_NUMBER), jnp.float32)

    params, labels = make_gcn_params(w1, b1, w2, b2)   # one-time pad/cast (hoisted out of forward)

    out = gcn_forward(a, x, params, labels=labels)
    out = jax.block_until_ready(out)

    # reference check in plain JAX (f32 throughout)
    xw_ref = jnp.einsum("bnf,fh->bnh", x, w1)
    h_ref = jnp.maximum(jnp.einsum("bnm,bmh->bnh", a, xw_ref) + b1, 0.0)
    hw_ref = jnp.einsum("bnh,hl->bnl", h_ref, w2)
    out_ref = jnp.einsum("bnm,bml->bnl", a, hw_ref) + b2

    assert out.shape == (BATCH, N, LABEL_NUMBER)
    # bf16 MXU operands + bf16 output store with f32 accumulate -> relaxed tolerance.
    assert jnp.allclose(out, out_ref, atol=5e-2, rtol=5e-2), (
        float(jnp.max(jnp.abs(out - out_ref))))

    print("KERNEL_OK")
</pallas_src>

<mosaic_0001>
module attributes {stable_mosaic.version = 11 : i64} {
  func.func @gcn_kernel(%arg0: i32, %arg1: memref<1x128x128xbf16, #tpu.memory_space<vmem>>, %arg2: memref<1x128x64xbf16, #tpu.memory_space<vmem>>, %arg3: memref<64x128xbf16, #tpu.memory_space<vmem>>, %arg4: memref<1x128xf32, #tpu.memory_space<vmem>>, %arg5: memref<128x128xbf16, #tpu.memory_space<vmem>>, %arg6: memref<1x128xf32, #tpu.memory_space<vmem>>, %arg7: memref<1x128x128xbf16, #tpu.memory_space<vmem>>) attributes {dimension_semantics = [#tpu.dimension_semantics<parallel>], iteration_bounds = array<i64: 2>, scalar_prefetch = 0 : i64, scratch_operands = 0 : i64, tpu.core_type = #tpu.core_type<tc>, window_params = [{transform_indices = @transform_0, window_bounds = array<i64: 1, 128, 128>}, {transform_indices = @transform_1, window_bounds = array<i64: 1, 128, 64>}, {pipeline_mode = #tpu.pipeline_mode<synchronous>, transform_indices = @transform_2, window_bounds = array<i64: 64, 128>}, {pipeline_mode = #tpu.pipeline_mode<synchronous>, transform_indices = @transform_3, window_bounds = array<i64: 1, 128>}, {pipeline_mode = #tpu.pipeline_mode<synchronous>, transform_indices = @transform_4, window_bounds = array<i64: 128, 128>}, {pipeline_mode = #tpu.pipeline_mode<synchronous>, transform_indices = @transform_5, window_bounds = array<i64: 1, 128>}, {transform_indices = @transform_6, window_bounds = array<i64: 1, 128, 128>}]} {
    %c0 = arith.constant 0 : index
    %c0_0 = arith.constant 0 : index
    %c0_1 = arith.constant 0 : index
    %0 = vector.load %arg1[%c0, %c0_0, %c0_1] : memref<1x128x128xbf16, #tpu.memory_space<vmem>>, vector<1x128x128xbf16>
    %1 = vector.shape_cast %0 : vector<1x128x128xbf16> to vector<128x128xbf16>
    %c0_2 = arith.constant 0 : index
    %c0_3 = arith.constant 0 : index
    %c0_4 = arith.constant 0 : index
    %2 = vector.load %arg2[%c0_2, %c0_3, %c0_4] : memref<1x128x64xbf16, #tpu.memory_space<vmem>>, vector<1x128x64xbf16>
    %3 = vector.shape_cast %2 : vector<1x128x64xbf16> to vector<128x64xbf16>
    %c0_5 = arith.constant 0 : index
    %c0_6 = arith.constant 0 : index
    %4 = vector.load %arg3[%c0_5, %c0_6] : memref<64x128xbf16, #tpu.memory_space<vmem>>, vector<64x128xbf16>
    %cst = arith.constant dense<0.000000e+00> : vector<128x128xf32>
    %5 = tpu.matmul %3, %4, %cst {dimension_numbers = #tpu.dot_dimension_numbers<[1], [0], [0], [1], [0, 0, 1, 1], [], []>} : vector<128x64xbf16>, vector<64x128xbf16>, vector<128x128xf32> -> vector<128x128xf32>
    %6 = arith.truncf %5 : vector<128x128xf32> to vector<128x128xbf16>
    %cst_7 = arith.constant dense<0.000000e+00> : vector<128x128xf32>
    %7 = tpu.matmul %1, %6, %cst_7 {dimension_numbers = #tpu.dot_dimension_numbers<[1], [0], [0], [1], [0, 0, 1, 1], [], []>} : vector<128x128xbf16>, vector<128x128xbf16>, vector<128x128xf32> -> vector<128x128xf32>
    %c0_8 = arith.constant 0 : index
    %c0_9 = arith.constant 0 : index
    %8 = vector.load %arg4[%c0_8, %c0_9] : memref<1x128xf32, #tpu.memory_space<vmem>>, vector<1x128xf32>
    %9 = vector.broadcast %8 : vector<1x128xf32> to vector<128x128xf32>
    %10 = arith.addf %7, %9 : vector<128x128xf32>
    %cst_10 = arith.constant 0.000000e+00 : f32
    %11 = vector.broadcast %cst_10 : f32 to vector<128x128xf32>
    %12 = arith.maximumf %10, %11 : vector<128x128xf32>
    %13 = arith.truncf %12 : vector<128x128xf32> to vector<128x128xbf16>
    %c0_11 = arith.constant 0 : index
    %c0_12 = arith.constant 0 : index
    %14 = vector.load %arg5[%c0_11, %c0_12] : memref<128x128xbf16, #tpu.memory_space<vmem>>, vector<128x128xbf16>
    %cst_13 = arith.constant dense<0.000000e+00> : vector<128x128xf32>
    %15 = tpu.matmul %13, %14, %cst_13 {dimension_numbers = #tpu.dot_dimension_numbers<[1], [0], [0], [1], [0, 0, 1, 1], [], []>} : vector<128x128xbf16>, vector<128x128xbf16>, vector<128x128xf32> -> vector<128x128xf32>
    %16 = arith.truncf %15 : vector<128x128xf32> to vector<128x128xbf16>
    %cst_14 = arith.constant dense<0.000000e+00> : vector<128x128xf32>
    %17 = tpu.matmul %1, %16, %cst_14 {dimension_numbers = #tpu.dot_dimension_numbers<[1], [0], [0], [1], [0, 0, 1, 1], [], []>} : vector<128x128xbf16>, vector<128x128xbf16>, vector<128x128xf32> -> vector<128x128xf32>
    %c0_15 = arith.constant 0 : index
    %c0_16 = arith.constant 0 : index
    %18 = vector.load %arg6[%c0_15, %c0_16] : memref<1x128xf32, #tpu.memory_space<vmem>>, vector<1x128xf32>
    %19 = vector.broadcast %18 : vector<1x128xf32> to vector<128x128xf32>
    %20 = arith.addf %17, %19 : vector<128x128xf32>
    %21 = arith.truncf %20 : vector<128x128xf32> to vector<128x128xbf16>
    %c0_17 = arith.constant 0 : index
    %c0_18 = arith.constant 0 : index
    %c0_19 = arith.constant 0 : index
    %22 = vector.load %arg7[%c0_17, %c0_18, %c0_19] : memref<1x128x128xbf16, #tpu.memory_space<vmem>>, vector<1x128x128xbf16>
    %23 = vector.shape_cast %22 : vector<1x128x128xbf16> to vector<128x128xbf16>
    %24 = vector.shape_cast %21 : vector<128x128xbf16> to vector<1x128x128xbf16>
    tpu.vector_store %arg7[%c0_17, %c0_18, %c0_19], %24 {strides = array<i32>} : memref<1x128x128xbf16, #tpu.memory_space<vmem>>, vector<1x128x128xbf16>,
    return
  }
  func.func @transform_0(%arg0: i32) -> (i32, i32, i32) {
    %c0_i32 = arith.constant 0 : i32
    %c0_i32_0 = arith.constant 0 : i32
    %c0_i32_1 = arith.constant 0 : i32
    return %arg0, %c0_i32, %c0_i32_0 : i32, i32, i32
  }
  func.func @transform_1(%arg0: i32) -> (i32, i32, i32) {
    %c0_i32 = arith.constant 0 : i32
    %c0_i32_0 = arith.constant 0 : i32
    %c0_i32_1 = arith.constant 0 : i32
    return %arg0, %c0_i32, %c0_i32_0 : i32, i32, i32
  }
  func.func @transform_2(%arg0: i32) -> (i32, i32) {
    %c0_i32 = arith.constant 0 : i32
    %c0_i32_0 = arith.constant 0 : i32
    %c0_i32_1 = arith.constant 0 : i32
    return %c0_i32, %c0_i32_0 : i32, i32
  }
  func.func @transform_3(%arg0: i32) -> (i32, i32) {
    %c0_i32 = arith.constant 0 : i32
    %c0_i32_0 = arith.constant 0 : i32
    %c0_i32_1 = arith.constant 0 : i32
    return %c0_i32, %c0_i32_0 : i32, i32
  }
  func.func @transform_4(%arg0: i32) -> (i32, i32) {
    %c0_i32 = arith.constant 0 : i32
    %c0_i32_0 = arith.constant 0 : i32
    %c0_i32_1 = arith.constant 0 : i32
    return %c0_i32, %c0_i32_0 : i32, i32
  }
  func.func @transform_5(%arg0: i32) -> (i32, i32) {
    %c0_i32 = arith.constant 0 : i32
    %c0_i32_0 = arith.constant 0 : i32
    %c0_i32_1 = arith.constant 0 : i32
    return %c0_i32, %c0_i32_0 : i32, i32
  }
  func.func @transform_6(%arg0: i32) -> (i32, i32, i32) {
    %c0_i32 = arith.constant 0 : i32
    %c0_i32_0 = arith.constant 0 : i32
    %c0_i32_1 = arith.constant 0 : i32
    return %arg0, %c0_i32, %c0_i32_0 : i32, i32, i32
  }
}

</mosaic_0001>

<bundles_post_ra>
// kernel: gcn_forward.1
= control target key start
LH: loop header
LB: loop body
LE: loop exit
PB: predicated region body
PF: predicated region fallthrough
CT: control target
= control target key end

     0   :  { %s1511_s21 = smov 0   ;;  %s1634_s0 = inlined_call_operand.vmem [shape: bf16[2,128,128], index: 0, kind: input, shape index: {}]   ;;  %s1635_s1 = inlined_call_operand.vmem [shape: bf16[2,128,64], index: 1, kind: input, shape index: {}]   ;;  %s1636_s2 = inlined_call_operand.vmem [shape: bf16[64,128], index: 2, kind: input, shape index: {}]   ;;  %s1637_s3 = inlined_call_operand.vmem [shape: f32[1,128], index: 3, kind: input, shape index: {}]   ;;  %s1638_s4 = inlined_call_operand.vmem [shape: bf16[128,128], index: 4, kind: input, shape index: {}]   ;;  %s1639_s5 = inlined_call_operand.vmem [shape: f32[1,128], index: 5, kind: input, shape index: {}]   ;;  %s1640_s6 = inlined_call_operand.vmem [shape: bf16[2,128,128], index: 6, kind: output, shape index: {}]  }
   0x1 LB: > { %s1103_s22 = sadd.s32 4294967295, %s1474_s21   ;;  %p1107_p0 = scmp.ge.s32.totalorder %s1474_s21, 1  ;;  %s1474_s21 = sphi %s1511_s21, %s16_s21  }
   0x2   : > { %p222_p1 = scmp.lt.s32.totalorder %s1474_s21, 3 }
   0x4   : > { %p223_p2 = pnand %p1107_p0, %p222_p1 }
   0x5   : > { %p257_p3 = scmp.lt.s32.totalorder (!%p223_p2), %s1103_s22, 1 }
   0x6   : > { %226 = sbr.rel (%p223_p2) target bundleno = 964 (0x3c4), region = 44 }
   0xb   : > { %v1440_v0 = vld [vmem:[%s1636_s2 + $0x18] sm:$0xff]   ;;  %v1441_v1 = vld [vmem:[%s1636_s2 + $0x10] sm:$0xff]   ;;  %s1642_s22 = smov (!%p257_p3, %s1103_s22), 1  ;;  %vm377_vm0 = vcmask 523264   ;;  %v1442_v2 = vld [vmem:[%s1636_s2 + $0x8] sm:$0xff]  }
   0xc   : > { %1296 = vmatprep.subr.bf16.mxu0 %v1440_v0  ;;  %s1528_s29 = sshll.u32 %s1642_s22, 6  ;;  %v1443_v4 = vld [vmem:[%s1636_s2] sm:$0xff]   ;;  %v1460_v13 = vld [vmem:[%s1638_s4 + $0x38] sm:$0xff]   ;;  %v1461_v14 = vld [vmem:[%s1638_s4 + $0x30] sm:$0xff]  }
   0xd   : > { %1297 = vmatpush3.bf16.msra.mxu0 %v1440_v0  ;;  %s266_s8 = scalar_lea.vmem %s1635_s1, %s1528_s29  ;;  %s1549_s13 = scalar_lea.vmem %s1634_s0, %s1528_s29  ;;  %v1462_v15 = vld [vmem:[%s1638_s4 + $0x28] sm:$0xff]   ;;  %v1463_v16 = vld [vmem:[%s1638_s4 + $0x20] sm:$0xff]   ;;  %v1464_v17 = vld [vmem:[%s1638_s4 + $0x18] sm:$0xff]  }
   0xe   : > { %1298 = vmatprep.subr.bf16.mxu0 %v1441_v1  ;;  %v1444_v3 = vld [vmem:[%s266_s8] sm:$0xff]   ;;  %v1445_v5 = vld [vmem:[%s266_s8 + $0x8] sm:$0xff]   ;;  %v1446_v6 = vld [vmem:[%s266_s8 + $0x10] sm:$0xff]   ;;  %s1621_s14 = scalar_lea.vmem %s1640_s6, %s1528_s29 }
   0xf   : > { %1304 = vmatprep.mubr.msk.bf16.mxu0 %vm377_vm0, %v1444_v3  ;;  %v1447_v7 = vld [vmem:[%s266_s8 + $0x18] sm:$0xff]   ;;  %v1448_v8 = vld [vmem:[%s266_s8 + $0x20] sm:$0xff]   ;;  %v1449_v9 = vld [vmem:[%s266_s8 + $0x28] sm:$0xff]  }
  0x10   : > { %v1450_v10 = vld [vmem:[%s266_s8 + $0x30] sm:$0xff]   ;;  %v1451_v11 = vld [vmem:[%s266_s8 + $0x38] sm:$0xff]   ;;  %v1552_v12 = vld [vmem:[%s1549_s13] sm:$0xff]  }
  0x11   : > { %1299 = vmatpush3.bf16.msra.mxu0 %v1441_v1  ;;  %1336 = vmatprep.mubr.bf16.mxu1 %v1552_v12  ;;  %v1571_v42 = vld [vmem:[%s1549_s13 + $0x8] sm:$0xff]   ;;  %v1454_v43 = vld [vmem:[%s1549_s13 + $0x10] sm:$0xff]   ;;  %v1576_v44 = vld [vmem:[%s1549_s13 + $0x18] sm:$0xff]  }
  0x12   : > { %1300 = vmatprep.subr.bf16.mxu0 %v1442_v2  ;;  %v1579_v45 = vld [vmem:[%s1549_s13 + $0x20] sm:$0xff]   ;;  %v1584_v46 = vld [vmem:[%s1549_s13 + $0x28] sm:$0xff]   ;;  %v1587_v47 = vld [vmem:[%s1549_s13 + $0x30] sm:$0xff]  }
  0x13   : > { %v1592_v48 = vld [vmem:[%s1549_s13 + $0x38] sm:$0xff]   ;;  %v1465_v49 = vld [vmem:[%s1638_s4 + $0x10] sm:$0xff]   ;;  %v1466_v50 = vld [vmem:[%s1638_s4 + $0x8] sm:$0xff]  }
  0x14   : > { %v1467_v51 = vld [vmem:[%s1638_s4] sm:$0xff]  }
  0x15   : > { %1301 = vmatpush3.bf16.msra.mxu0 %v1442_v2  ;;  %v1134_v54 = vld [vmem:[%s1637_s3] ss:$0 sm:$0xff] }
  0x16   : > { %1302 = vmatprep.subr.bf16.mxu0 %v1443_v4 }
  0x19   : > { %1303 = vmatpush3.bf16.msra.mxu0 %v1443_v4 }
  0x1a   : > { %1352 = vmatprep.subr.bf16.mxu0 %v1460_v13 }
  0x1c   : > { %1305 = vmatmul.mubr.msk.bf16.vlgmr.msra.gmra.mxu0 %vm377_vm0, %v1445_v5 }
  0x1d   : > { %1308 = vmatprep.mubr.msk.bf16.mxu0 %vm377_vm0, %v1446_v6  ;;  %1353 = vmatpush3.bf16.msra.mxu0 %v1460_v13 }
  0x1e   : > { %1354 = vmatprep.subr.bf16.mxu0 %v1461_v14 }
  0x21   : > { %1355 = vmatpush3.bf16.msra.mxu0 %v1461_v14 }
  0x22   : > { %1356 = vmatprep.subr.bf16.mxu0 %v1462_v15 }
  0x24   : > { %1309 = vmatmul.mubr.msk.bf16.gmra.mxu0 %vm377_vm0, %v1447_v7 }
  0x25   : > { %1312 = vmatprep.mubr.msk.bf16.mxu0 %vm377_vm0, %v1448_v8  ;;  %1357 = vmatpush3.bf16.msra.mxu0 %v1462_v15 }
  0x26   : > { %1358 = vmatprep.subr.bf16.mxu0 %v1463_v16 }
  0x29   : > { %1359 = vmatpush3.bf16.msra.mxu0 %v1463_v16 }
  0x2a   : > { %1360 = vmatprep.subr.bf16.mxu0 %v1464_v17 }
  0x2c   : > { %1313 = vmatmul.mubr.msk.bf16.gmra.mxu0 %vm377_vm0, %v1449_v9 }
  0x2d   : > { %1316 = vmatprep.mubr.msk.bf16.mxu0 %vm377_vm0, %v1450_v10  ;;  %1361 = vmatpush3.bf16.msra.mxu0 %v1464_v17 }
  0x2e   : > { %1362 = vmatprep.subr.bf16.mxu0 %v1465_v49 }
  0x31   : > { %1363 = vmatpush3.bf16.msra.mxu0 %v1465_v49 }
  0x32   : > { %1364 = vmatprep.subr.bf16.mxu0 %v1466_v50 }
  0x34   : > { %1317 = vmatmul.mubr.msk.bf16.gmra.mxu0 %vm377_vm0, %v1451_v11 }
  0x35   : > { %1365 = vmatpush3.bf16.msra.mxu0 %v1466_v50 }
  0x36   : > { %1366 = vmatprep.subr.bf16.mxu0 %v1467_v51 }
  0x39   : > { %1367 = vmatpush3.bf16.msra.mxu0 %v1467_v51 }
  0xdc   : > { %v1306_v18 = vpop.f32.mrf.mxu0 }
  0xde   : > { %v436_v19 = vpop.f32.mrf.mxu0 }
  0xe0   : > { %v1307_v20 = vpop.f32.mrf.mxu0 }
  0xe1   : > { %v500_v40 = vpack.c.bf16 %v1307_v20, %v1306_v18 }
  0xe2   : > { %v439_v21 = vpop.f32.mrf.mxu0 }
  0xe3   : > { %v499_v41 = vpack.c.bf16 %v439_v21, %v436_v19 }
  0xe4   : > { %v1310_v22 = vpop.f32.mrf.mxu0 }
  0xe6   : > { %v452_v23 = vpop.f32.mrf.mxu0 }
  0xe8   : > { %v1311_v24 = vpop.f32.mrf.mxu0 }
  0xe9   : > { %v502_v38 = vpack.c.bf16 %v1311_v24, %v1310_v22 }
  0xea   : > { %v455_v25 = vpop.f32.mrf.mxu0 }
  0xeb   : > { %v501_v39 = vpack.c.bf16 %v455_v25, %v452_v23 }
  0xec   : > { %v1314_v26 = vpop.f32.mrf.mxu0 }
  0xee   : > { %v468_v27 = vpop.f32.mrf.mxu0 }
  0xf0   : > { %v1315_v28 = vpop.f32.mrf.mxu0 }
  0xf1   : > { %v504_v36 = vpack.c.bf16 %v1315_v28, %v1314_v26 }
  0xf2   : > { %v471_v29 = vpop.f32.mrf.mxu0 }
  0xf3   : > { %v503_v37 = vpack.c.bf16 %v471_v29, %v468_v27 }
  0xf4   : > { %v1318_v30 = vpop.f32.mrf.mxu0 }
  0xf6   : > { %v484_v31 = vpop.f32.mrf.mxu0 }
  0xf8   : > { %v1319_v32 = vpop.f32.mrf.mxu0 }
  0xf9   : > { %v506_v33 = vpack.c.bf16 %v1319_v32, %v1318_v30 }
  0xfa   : > { %v487_v34 = vpop.f32.mrf.mxu0 }
  0xfb   : > { %v505_v35 = vpack.c.bf16 %v487_v34, %v484_v31  ;;  %1320 = vmatprep.subr.bf16.mxu1 %v506_v33 }
  0xfc   : > { %1321 = vmatpush3.bf16.msra.mxu1 %v506_v33 }
  0xfd   : > { %1322 = vmatprep.subr.bf16.mxu1 %v505_v35 }
 0x100   : > { %1323 = vmatpush3.bf16.msra.mxu1 %v505_v35 }
 0x101   : > { %1324 = vmatprep.subr.bf16.mxu1 %v504_v36 }
 0x104   : > { %1325 = vmatpush3.bf16.msra.mxu1 %v504_v36 }
 0x105   : > { %1326 = vmatprep.subr.bf16.mxu1 %v503_v37 }
 0x108   : > { %1327 = vmatpush3.bf16.msra.mxu1 %v503_v37 }
 0x109   : > { %1328 = vmatprep.subr.bf16.mxu1 %v502_v38 }
 0x10c   : > { %1329 = vmatpush3.bf16.msra.mxu1 %v502_v38 }
 0x10d   : > { %1330 = vmatprep.subr.bf16.mxu1 %v501_v39 }
 0x110   : > { %1331 = vmatpush3.bf16.msra.mxu1 %v501_v39 }
 0x111   : > { %1332 = vmatprep.subr.bf16.mxu1 %v500_v40 }
 0x114   : > { %1333 = vmatpush3.bf16.msra.mxu1 %v500_v40 }
 0x115   : > { %1334 = vmatprep.subr.bf16.mxu1 %v499_v41 }
 0x118   : > { %1335 = vmatpush3.bf16.msra.mxu1 %v499_v41 }
 0x11b   : > { %1337 = vmatmul.mubr.bf16.vlgmr.msra.gmra.mxu1 %v1571_v42 }
 0x11c   : > { %1340 = vmatprep.mubr.bf16.mxu1 %v1454_v43 }
 0x123   : > { %1341 = vmatmul.mubr.bf16.gmra.mxu1 %v1576_v44 }
 0x124   : > { %1344 = vmatprep.mubr.bf16.mxu1 %v1579_v45 }
 0x12b   : > { %1345 = vmatmul.mubr.bf16.gmra.mxu1 %v1584_v46 }
 0x12c   : > { %1348 = vmatprep.mubr.bf16.mxu1 %v1587_v47 }
 0x133   : > { %1349 = vmatmul.mubr.bf16.gmra.mxu1 %v1592_v48 }
 0x134   : > { %1404 = vmatprep.mubr.bf16.mxu1 %v1454_v43 }
 0x1db   : > { %v1338_v52 = vpop.f32.mrf.mxu1 }
 0x1dc   : > { %v605_v58 = vadd.f32 %v1338_v52, %v1134_v54 }
 0x1dd   : > { %v596_v53 = vpop.f32.mrf.mxu1 }
 0x1de   : > { %v597_v56 = vadd.f32 %v1134_v54, %v596_v53  ;;  %v661_v1 = vmax.f32 %v605_v58, 0.0 }
 0x1df   : > { %v1339_v55 = vpop.f32.mrf.mxu1 }
 0x1e0   : > { %v608_v57 = vadd.f32 %v1339_v55, %v1134_v54  ;;  %v659_v63 = vmax.f32 %v597_v56, 0.0 }
 0x1e1   : > { %v599_v59 = vpop.f32.mrf.mxu1 }
 0x1e2   : > { %v600_v60 = vadd.f32 %v1134_v54, %v599_v59  ;;  %v662_v61 = vmax.f32 %v608_v57, 0.0 }
 0x1e3   : > { %v1342_v62 = vpop.f32.mrf.mxu1 }
 0x1e4   : > { %v660_v0 = vmax.f32 %v600_v60, 0.0  ;;  %v676_v4 = vpack.c.bf16 %v662_v61, %v661_v1  ;;  %v621_v8 = vadd.f32 %v1342_v62, %v1134_v54 }
 0x1e5   : > { %v612_v2 = vpop.f32.mrf.mxu1 }
 0x1e6   : > { %v675_v3 = vpack.c.bf16 %v660_v0, %v659_v63  ;;  %v613_v6 = vadd.f32 %v1134_v54, %v612_v2  ;;  %v665_v16 = vmax.f32 %v621_v8, 0.0 }
 0x1e7   : > { %v1343_v5 = vpop.f32.mrf.mxu1 }
 0x1e8   : > { %v624_v7 = vadd.f32 %v1343_v5, %v1134_v54  ;;  %1368 = vmatprep.mubr.bf16.mxu0 %v675_v3  ;;  %v663_v14 = vmax.f32 %v613_v6, 0.0 }
 0x1e9   : > { %v615_v9 = vpop.f32.mrf.mxu1  ;;  %1369 = vmatmul.mubr.bf16.vlgmr.msra.gmra.mxu0 %v676_v4 }
 0x1ea   : > { %v616_v10 = vadd.f32 %v1134_v54, %v615_v9  ;;  %v666_v11 = vmax.f32 %v624_v7, 0.0 }
 0x1eb   : > { %v1346_v13 = vpop.f32.mrf.mxu1 }
 0x1ec   : > { %v664_v15 = vmax.f32 %v616_v10, 0.0  ;;  %v678_v19 = vpack.c.bf16 %v666_v11, %v665_v16  ;;  %v637_v23 = vadd.f32 %v1346_v13, %v1134_v54 }
 0x1ed   : > { %v628_v17 = vpop.f32.mrf.mxu1 }
 0x1ee   : > { %v677_v18 = vpack.c.bf16 %v664_v15, %v663_v14  ;;  %v629_v21 = vadd.f32 %v1134_v54, %v628_v17  ;;  %v669_v30 = vmax.f32 %v637_v23, 0.0  ;;  %v1151_v14 = vld [vmem:[%s1639_s5] ss:$0 sm:$0xff] }
 0x1ef   : > { %v1347_v20 = vpop.f32.mrf.mxu1 }
 0x1f0   : > { %v640_v22 = vadd.f32 %v1347_v20, %v1134_v54  ;;  %1372 = vmatprep.mubr.bf16.mxu0 %v677_v18  ;;  %v667_v28 = vmax.f32 %v629_v21, 0.0 }
 0x1f1   : > { %v631_v24 = vpop.f32.mrf.mxu1  ;;  %1373 = vmatmul.mubr.bf16.gmra.mxu0 %v678_v19 }
 0x1f2   : > { %v632_v25 = vadd.f32 %v1134_v54, %v631_v24  ;;  %v670_v26 = vmax.f32 %v640_v22, 0.0 }
 0x1f3   : > { %v1350_v27 = vpop.f32.mrf.mxu1 }
 0x1f4   : > { %v668_v29 = vmax.f32 %v632_v25, 0.0  ;;  %v680_v33 = vpack.c.bf16 %v670_v26, %v669_v30  ;;  %v653_v37 = vadd.f32 %v1350_v27, %v1134_v54 }
 0x1f5   : > { %v644_v31 = vpop.f32.mrf.mxu1 }
 0x1f6   : > { %v679_v32 = vpack.c.bf16 %v668_v29, %v667_v28  ;;  %v645_v35 = vadd.f32 %v1134_v54, %v644_v31  ;;  %v673_v49 = vmax.f32 %v653_v37, 0.0 }
 0x1f7   : > { %v1351_v34 = vpop.f32.mrf.mxu1 }
 0x1f8   : > { %v656_v36 = vadd.f32 %v1351_v34, %v1134_v54  ;;  %1376 = vmatprep.mubr.bf16.mxu0 %v679_v32  ;;  %v671_v41 = vmax.f32 %v645_v35, 0.0 }
 0x1f9   : > { %v647_v38 = vpop.f32.mrf.mxu1  ;;  %1377 = vmatmul.mubr.bf16.gmra.mxu0 %v680_v33 }
 0x1fa   : > { %v648_v39 = vadd.f32 %v1134_v54, %v647_v38  ;;  %v674_v40 = vmax.f32 %v656_v36, 0.0 }
 0x1fc   : > { %v672_v43 = vmax.f32 %v648_v39, 0.0  ;;  %v682_v51 = vpack.c.bf16 %v674_v40, %v673_v49 }
 0x1fe   : > { %v681_v50 = vpack.c.bf16 %v672_v43, %v671_v41 }
 0x200   : > { %1380 = vmatprep.mubr.bf16.mxu0 %v681_v50 }
 0x201   : > { %1381 = vmatmul.mubr.bf16.gmra.mxu0 %v682_v51 }
 0x202   : > { %1400 = vmatprep.mubr.bf16.mxu0 %v1552_v12 }
 0x2a9   : > { %v1370_v52 = vpop.f32.mrf.mxu0 }
 0x2ab   : > { %v781_v53 = vpop.f32.mrf.mxu0 }
 0x2ad   : > { %v1371_v55 = vpop.f32.mrf.mxu0 }
 0x2ae   : > { %v845_v9 = vpack.c.bf16 %v1371_v55, %v1370_v52 }
 0x2af   : > { %v784_v56 = vpop.f32.mrf.mxu0 }
 0x2b0   : > { %v844_v10 = vpack.c.bf16 %v784_v56, %v781_v53 }
 0x2b1   : > { %v1374_v57 = vpop.f32.mrf.mxu0 }
 0x2b3   : > { %v797_v58 = vpop.f32.mrf.mxu0 }
 0x2b5   : > { %v1375_v59 = vpop.f32.mrf.mxu0 }
 0x2b6   : > { %v847_v7 = vpack.c.bf16 %v1375_v59, %v1374_v57 }
 0x2b7   : > { %v800_v60 = vpop.f32.mrf.mxu0 }
 0x2b8   : > { %v846_v8 = vpack.c.bf16 %v800_v60, %v797_v58 }
 0x2b9   : > { %v1378_v61 = vpop.f32.mrf.mxu0 }
 0x2bb   : > { %v813_v54 = vpop.f32.mrf.mxu0 }
 0x2bd   : > { %v1379_v62 = vpop.f32.mrf.mxu0 }
 0x2be   : > { %v849_v12 = vpack.c.bf16 %v1379_v62, %v1378_v61 }
 0x2bf   : > { %v816_v63 = vpop.f32.mrf.mxu0 }
 0x2c0   : > { %v848_v6 = vpack.c.bf16 %v816_v63, %v813_v54 }
 0x2c1   : > { %v1382_v0 = vpop.f32.mrf.mxu0 }
 0x2c3   : > { %v829_v1 = vpop.f32.mrf.mxu0 }
 0x2c5   : > { %v1383_v2 = vpop.f32.mrf.mxu0 }
 0x2c6   : > { %v851_v3 = vpack.c.bf16 %v1383_v2, %v1382_v0 }
 0x2c7   : > { %v832_v4 = vpop.f32.mrf.mxu0 }
 0x2c8   : > { %v850_v5 = vpack.c.bf16 %v832_v4, %v829_v1  ;;  %1384 = vmatprep.subr.bf16.mxu0 %v851_v3  ;;  %1416 = vmatprep.subr.bf16.mxu1 %v851_v3 }
 0x2c9   : > { %1385 = vmatpush3.bf16.msra.mxu0 %v851_v3  ;;  %1424 = vmatpush3.bf16.msra.mxu1 %v851_v3 }
 0x2ca   : > { %1386 = vmatprep.subr.bf16.mxu0 %v850_v5  ;;  %1417 = vmatprep.subr.bf16.mxu1 %v850_v5 }
 0x2cd   : > { %1387 = vmatpush3.bf16.msra.mxu0 %v850_v5  ;;  %1425 = vmatpush3.bf16.msra.mxu1 %v850_v5 }
 0x2ce   : > { %1388 = vmatprep.subr.bf16.mxu0 %v849_v12  ;;  %1418 = vmatprep.subr.bf16.mxu1 %v849_v12 }
 0x2d1   : > { %1389 = vmatpush3.bf16.msra.mxu0 %v849_v12  ;;  %1426 = vmatpush3.bf16.msra.mxu1 %v849_v12 }
 0x2d2   : > { %1390 = vmatprep.subr.bf16.mxu0 %v848_v6  ;;  %1419 = vmatprep.subr.bf16.mxu1 %v848_v6 }
 0x2d5   : > { %1391 = vmatpush3.bf16.msra.mxu0 %v848_v6  ;;  %1427 = vmatpush3.bf16.msra.mxu1 %v848_v6 }
 0x2d6   : > { %1392 = vmatprep.subr.bf16.mxu0 %v847_v7  ;;  %1420 = vmatprep.subr.bf16.mxu1 %v847_v7 }
 0x2d9   : > { %1393 = vmatpush3.bf16.msra.mxu0 %v847_v7  ;;  %1428 = vmatpush3.bf16.msra.mxu1 %v847_v7 }
 0x2da   : > { %1394 = vmatprep.subr.bf16.mxu0 %v846_v8  ;;  %1421 = vmatprep.subr.bf16.mxu1 %v846_v8 }
 0x2dd   : > { %1395 = vmatpush3.bf16.msra.mxu0 %v846_v8  ;;  %1429 = vmatpush3.bf16.msra.mxu1 %v846_v8 }
 0x2de   : > { %1396 = vmatprep.subr.bf16.mxu0 %v845_v9  ;;  %1422 = vmatprep.subr.bf16.mxu1 %v845_v9 }
 0x2e1   : > { %1397 = vmatpush3.bf16.msra.mxu0 %v845_v9  ;;  %1430 = vmatpush3.bf16.msra.mxu1 %v845_v9 }
 0x2e2   : > { %1398 = vmatprep.subr.bf16.mxu0 %v844_v10  ;;  %1423 = vmatprep.subr.bf16.mxu1 %v844_v10 }
 0x2e5   : > { %1399 = vmatpush3.bf16.msra.mxu0 %v844_v10  ;;  %1431 = vmatpush3.bf16.msra.mxu1 %v844_v10 }
 0x2e8   : > { %1405 = vmatmul.mubr.bf16.vlgmr.msra.gmra.mxu1 %v1576_v44  ;;  %1401 = vmatmul.mubr.bf16.vlgmr.msra.gmra.mxu0 %v1571_v42 }
 0x2e9   : > { %1408 = vmatprep.mubr.bf16.mxu1 %v1579_v45 }
 0x2f0   : > { %1409 = vmatmul.mubr.bf16.gmra.mxu1 %v1584_v46 }
 0x2f1   : > { %1412 = vmatprep.mubr.bf16.mxu1 %v1587_v47 }
 0x2f8   : > { %1413 = vmatmul.mubr.bf16.gmra.mxu1 %v1592_v48 }
 0x3a8   : > { %v1406_v11 = vpop.f32.mrf.mxu1  ;;  %v1402_v13 = vpop.f32.mrf.mxu0 }
 0x3a9   : > { %v902_v44 = vadd.f32 %v1402_v13, %v1151_v14  ;;  %v918_v18 = vadd.f32 %v1406_v11, %v1151_v14 }
 0x3aa   : > { %v909_v15 = vpop.f32.mrf.mxu1  ;;  %v893_v16 = vpop.f32.mrf.mxu0 }
 0x3ab   : > { %v894_v19 = vadd.f32 %v1151_v14, %v893_v16  ;;  %v910_v20 = vadd.f32 %v1151_v14, %v909_v15 }
 0x3ac   : > { %v1407_v17 = vpop.f32.mrf.mxu1  ;;  %v1403_v42 = vpop.f32.mrf.mxu0 }
 0x3ad   : > { %v921_v45 = vadd.f32 %v1407_v17, %v1151_v14  ;;  %v905_v46 = vadd.f32 %v1403_v42, %v1151_v14 }
 0x3ae   : > { %v912_v47 = vpop.f32.mrf.mxu1  ;;  %v896_v48 = vpop.f32.mrf.mxu0 }
 0x3af   : > { %v1207_v21 = vpack.c.bf16 %v921_v45, %v918_v18  ;;  %v913_v22 = vadd.f32 %v1151_v14, %v912_v47  ;;  %v1197_v23 = vpack.c.bf16 %v905_v46, %v902_v44  ;;  %v897_v24 = vadd.f32 %v1151_v14, %v896_v48 }
 0x3b0   : > { %v1410_v25 = vpop.f32.mrf.mxu1 }
 0x3b1   : > { %1231 = vst [vmem:[%s1621_s14 + $0x18] sm:$0xff] %v1207_v21   ;;  %v1202_v26 = vpack.c.bf16 %v913_v22, %v910_v20  ;;  %1229 = vst [vmem:[%s1621_s14 + $0x8] sm:$0xff] %v1197_v23   ;;  %v1192_v27 = vpack.c.bf16 %v897_v24, %v894_v19  ;;  %v934_v30 = vadd.f32 %v1410_v25, %v1151_v14 }
 0x3b2   : > { %v925_v28 = vpop.f32.mrf.mxu1 }
 0x3b3   : > { %1230 = vst [vmem:[%s1621_s14 + $0x10] sm:$0xff] %v1202_v26   ;;  %1193 = vst [vmem:[%s1621_s14] sm:$0xff] %v1192_v27   ;;  %v926_v33 = vadd.f32 %v1151_v14, %v925_v28 }
 0x3b4   : > { %v1411_v29 = vpop.f32.mrf.mxu1 }
 0x3b5   : > { %v937_v31 = vadd.f32 %v1411_v29, %v1151_v14 }
 0x3b6   : > { %v928_v32 = vpop.f32.mrf.mxu1 }
 0x3b7   : > { %v1217_v34 = vpack.c.bf16 %v937_v31, %v934_v30  ;;  %v929_v35 = vadd.f32 %v1151_v14, %v928_v32 }
 0x3b8   : > { %v1414_v36 = vpop.f32.mrf.mxu1 }
 0x3b9   : > { %1233 = vst [vmem:[%s1621_s14 + $0x28] sm:$0xff] %v1217_v34   ;;  %v1212_v37 = vpack.c.bf16 %v929_v35, %v926_v33  ;;  %v950_v40 = vadd.f32 %v1414_v36, %v1151_v14 }
 0x3ba   : > { %v941_v38 = vpop.f32.mrf.mxu1 }
 0x3bb   : > { %1232 = vst [vmem:[%s1621_s14 + $0x20] sm:$0xff] %v1212_v37   ;;  %v942_v49 = vadd.f32 %v1151_v14, %v941_v38 }
 0x3bc   : > { %v1415_v39 = vpop.f32.mrf.mxu1 }
 0x3bd   : > { %v953_v41 = vadd.f32 %v1415_v39, %v1151_v14 }
 0x3be   : > { %v944_v43 = vpop.f32.mrf.mxu1 }
 0x3bf   : > { %v1227_v50 = vpack.c.bf16 %v953_v41, %v950_v40  ;;  %v945_v51 = vadd.f32 %v1151_v14, %v944_v43 }
 0x3c1   : > { %1235 = vst [vmem:[%s1621_s14 + $0x38] sm:$0xff] %v1227_v50   ;;  %v1222_v52 = vpack.c.bf16 %v945_v51, %v942_v49 }
 0x3c3   : > { %1234 = vst [vmem:[%s1621_s14 + $0x30] sm:$0xff] %v1222_v52  }
 0x3c4 PF: > { %s16_s21 = sadd.s32 1, %s1474_s21  }
 0x3c5   : > { %p13_p4 = scmp.ge.s32.totalorder %s16_s21, 4  }
 0x3c7   :  { %15 = sbr.rel (!%p13_p4) target bundleno = 1 (0x1), region = 77 }

</bundles_post_ra>
